<compile_context>
chip_gen: v7x
topology: tpu7x:2x2x1
jax: 0.10.0
libtpu: 0.0.40
codegen_flags: <defaults>
</compile_context>

<pallas_src>
import jax
import jax.numpy as jnp
from jax.experimental import pallas as pl
from jax.experimental.pallas import tpu as pltpu

IN_FEATURES = 2
OUT_FEATURES = 4
N_STACK = 4                               # torch.stack((x, x, x, x), dim=1)
OUT_WIDE = OUT_FEATURES * N_STACK         # 16 flat outputs per batch row
ROWS_PER_SLAB = 128 // OUT_WIDE           # 8 batch rows packed per 128-lane row
SLAB_IN = ROWS_PER_SLAB * IN_FEATURES     # 16 input values per slab row
MAX_TILE_ROWS = 4096                      # slab rows / step = 32768 batch rows
VMEM_LIMIT_BYTES = 32 * 1024 * 1024       # ~8 MiB used; headroom on all gens


def model_kernel(x_ref, m_ref, b_ref, o_ref):
    # x_ref: (tr, 16)   -- 8 batch rows x (f0, f1) packed per slab row
    # m_ref: (16, 128)  -- kron(I_8, tile(W^T, (1, 4)))  (block-diagonal)
    # b_ref: (1, 128)   -- tile(bias, (1, 32))
    # o_ref: (tr, 128)  -- 8 batch rows x 16 outputs packed per slab row
    acc = jnp.dot(x_ref[...], m_ref[...], preferred_element_type=jnp.float32)
    # Dropout (eval mode) == identity.
    o_ref[...] = (acc + b_ref[...]).astype(o_ref.dtype)


def _choose_tile_rows(rows):
    """Pick the slab-row tile: as big as the VMEM budget allows, but with
    >= 2 grid steps once there is enough work so v7x's two TensorCores both
    get DMAs to issue (grid axis is marked "parallel")."""
    if rows <= 2 * ROWS_PER_SLAB:       # tiny problem: single full-array step
        return rows
    if rows <= 2 * MAX_TILE_ROWS:       # split into two steps, 8-row aligned
        half = -(-rows // 2)
        return -(-half // 8) * 8
    return MAX_TILE_ROWS


def model_forward(x, w, b):
    """x: (B, 2) f32; w: (4, 2) torch-layout weight; b: (4,) bias.

    Returns (B, 4, 1, 4) float32, matching the PyTorch module output.
    """
    B = x.shape[0]

    # Pad the batch to a multiple of 8 so the output can be presented as a
    # lane-dense (B_pad//8, 128) slab; padded rows are dropped at the end.
    pad = (-B) % ROWS_PER_SLAB
    B_pad = B + pad
    if pad:
        x = jnp.pad(x, ((0, pad), (0, 0)))

    rows = B_pad // ROWS_PER_SLAB
    # Free, contiguous reshape: (B_pad, 2) -> (B_pad//8, 16).
    x_slab = x.reshape(rows, SLAB_IN)

    # Fold Linear + stack + lane packing into one constant matrix:
    #   W_exp = tile(W^T, (1, 4))             (2, 16)
    #   M     = kron(I_8, W_exp)              (16, 128) block-diagonal
    # so  out_slab = x_slab @ M + bias_wide directly in the packed layout.
    w_exp = jnp.tile(w.T, (1, N_STACK))                                # (2, 16)
    m = jnp.kron(jnp.eye(ROWS_PER_SLAB, dtype=x.dtype), w_exp)         # (16,128)
    bias_wide = jnp.tile(b.reshape(1, OUT_FEATURES),
                         (1, N_STACK * ROWS_PER_SLAB))                 # (1, 128)

    tile_rows = _choose_tile_rows(rows)
    grid = (pl.cdiv(rows, tile_rows),)

    cost = pl.CostEstimate(
        flops=int(2 * rows * SLAB_IN * 128),
        transcendentals=0,
        bytes_accessed=int((rows * (SLAB_IN + 128) + SLAB_IN * 128 + 128) * 4),
    )

    out_slab = pl.pallas_call(
        model_kernel,
        out_shape=jax.ShapeDtypeStruct((rows, 128), jnp.float32),
        grid_spec=pl.GridSpec(
            grid=grid,
            in_specs=[
                pl.BlockSpec((tile_rows, SLAB_IN), lambda i: (i, 0)),
                # Tiny weight/bias: constant index_map keeps them VMEM-resident
                # across grid steps (no per-step re-DMA).
                pl.BlockSpec((SLAB_IN, 128), lambda i: (0, 0)),
                pl.BlockSpec((1, 128), lambda i: (0, 0)),
            ],
            out_specs=pl.BlockSpec((tile_rows, 128), lambda i: (i, 0)),
        ),
        compiler_params=pltpu.CompilerParams(
            dimension_semantics=("parallel",),
            vmem_limit_bytes=VMEM_LIMIT_BYTES,
        ),
        cost_estimate=cost,
    )(x_slab, m, bias_wide)

    # Free, contiguous reshape: (rows, 128) == (B_pad, 16) -> (B_pad, 4, 1, 4).
    out = out_slab.reshape(B_pad, N_STACK, 1, OUT_FEATURES)
    return out[:B] if pad else out


if __name__ == "__main__":
    key = jax.random.PRNGKey(0)
    kx, kw, kb = jax.random.split(key, 3)

    B = 2
    x = jax.random.normal(kx, (B, IN_FEATURES), dtype=jnp.float32)

    # Deterministic Linear(2, 4) parameters (nn.Linear stores weight as
    # (out_features, in_features)).
    bound = 1.0 / (IN_FEATURES ** 0.5)
    w = jax.random.uniform(
        kw, (OUT_FEATURES, IN_FEATURES), minval=-bound, maxval=bound,
        dtype=jnp.float32)
    b = jax.random.uniform(
        kb, (OUT_FEATURES,), minval=-bound, maxval=bound, dtype=jnp.float32)

    out = jax.block_until_ready(model_forward(x, w, b))

    # Reference check in plain JAX (eval-mode dropout == identity).
    ref_lin = x @ w.T + b.reshape(1, OUT_FEATURES)               # (B, 4)
    ref = jnp.broadcast_to(ref_lin[:, None, None, :],
                           (B, N_STACK, 1, OUT_FEATURES))
    assert out.shape == (B, N_STACK, 1, OUT_FEATURES), out.shape
    assert jnp.allclose(out, ref, atol=1e-5, rtol=1e-5)

    print("KERNEL_OK")
</pallas_src>

<mosaic_0001>
module attributes {stable_mosaic.version = 11 : i64} {
  func.func @model_kernel(%arg0: i32, %arg1: memref<1x16xf32, #tpu.memory_space<vmem>>, %arg2: memref<16x128xf32, #tpu.memory_space<vmem>>, %arg3: memref<1x128xf32, #tpu.memory_space<vmem>>, %arg4: memref<1x128xf32, #tpu.memory_space<vmem>>) attributes {dimension_semantics = [#tpu.dimension_semantics<parallel>], iteration_bounds = array<i64: 1>, scalar_prefetch = 0 : i64, scratch_operands = 0 : i64, tpu.core_type = #tpu.core_type<tc>, window_params = [{transform_indices = @transform_0, window_bounds = array<i64: 1, 16>}, {pipeline_mode = #tpu.pipeline_mode<synchronous>, transform_indices = @transform_1, window_bounds = array<i64: 16, 128>}, {pipeline_mode = #tpu.pipeline_mode<synchronous>, transform_indices = @transform_2, window_bounds = array<i64: 1, 128>}, {transform_indices = @transform_3, window_bounds = array<i64: 1, 128>}]} {
    %c0 = arith.constant 0 : index
    %c0_0 = arith.constant 0 : index
    %0 = vector.load %arg1[%c0, %c0_0] : memref<1x16xf32, #tpu.memory_space<vmem>>, vector<1x16xf32>
    %c0_1 = arith.constant 0 : index
    %c0_2 = arith.constant 0 : index
    %1 = vector.load %arg2[%c0_1, %c0_2] : memref<16x128xf32, #tpu.memory_space<vmem>>, vector<16x128xf32>
    %cst = arith.constant dense<0.000000e+00> : vector<1x128xf32>
    %2 = tpu.matmul %0, %1, %cst {dimension_numbers = #tpu.dot_dimension_numbers<[1], [0], [0], [1], [0, 0, 1, 1], [], []>} : vector<1x16xf32>, vector<16x128xf32>, vector<1x128xf32> -> vector<1x128xf32>
    %c0_3 = arith.constant 0 : index
    %c0_4 = arith.constant 0 : index
    %3 = vector.load %arg3[%c0_3, %c0_4] : memref<1x128xf32, #tpu.memory_space<vmem>>, vector<1x128xf32>
    %4 = arith.addf %2, %3 : vector<1x128xf32>
    %c0_5 = arith.constant 0 : index
    %c0_6 = arith.constant 0 : index
    %5 = vector.load %arg4[%c0_5, %c0_6] : memref<1x128xf32, #tpu.memory_space<vmem>>, vector<1x128xf32>
    tpu.vector_store %arg4[%c0_5, %c0_6], %4 {strides = array<i32>} : memref<1x128xf32, #tpu.memory_space<vmem>>, vector<1x128xf32>,
    return
  }
  func.func @transform_0(%arg0: i32) -> (i32, i32) {
    %c0_i32 = arith.constant 0 : i32
    %c0_i32_0 = arith.constant 0 : i32
    return %arg0, %c0_i32 : i32, i32
  }
  func.func @transform_1(%arg0: i32) -> (i32, i32) {
    %c0_i32 = arith.constant 0 : i32
    %c0_i32_0 = arith.constant 0 : i32
    %c0_i32_1 = arith.constant 0 : i32
    return %c0_i32, %c0_i32_0 : i32, i32
  }
  func.func @transform_2(%arg0: i32) -> (i32, i32) {
    %c0_i32 = arith.constant 0 : i32
    %c0_i32_0 = arith.constant 0 : i32
    %c0_i32_1 = arith.constant 0 : i32
    return %c0_i32, %c0_i32_0 : i32, i32
  }
  func.func @transform_3(%arg0: i32) -> (i32, i32) {
    %c0_i32 = arith.constant 0 : i32
    %c0_i32_0 = arith.constant 0 : i32
    return %arg0, %c0_i32 : i32, i32
  }
}

</mosaic_0001>

<bundles_post_ra>
// kernel: tpu_custom_call.1
= control target key start
LH: loop header
LB: loop body
LE: loop exit
PB: predicated region body
PF: predicated region fallthrough
CT: control target
= control target key end

     0   :  { %8 = vsyncpa [#allocation3], 0  ;;  %s304_s0 = inlined_call_operand.hbm [shape: f32[1,16], index: 0, kind: input, shape index: {}]   ;;  %s305_s1 = inlined_call_operand.hbm [shape: f32[16,128], index: 1, kind: input, shape index: {}]   ;;  %s306_s2 = inlined_call_operand.vmem [shape: f32[1,128], index: 2, kind: input, shape index: {}]   ;;  %s307_s3 = inlined_call_operand.hbm [shape: f32[1,128], index: 3, kind: output, shape index: {}]  }
   0x1   :  { %9 = vsyncpa [#allocation6], 0 }
   0x2   :  { %10 = vsyncpa [#allocation4], 0  ;;  %s230_s12 = smov [#allocation2]   ;;  %s231_s14 = smov [#allocation5]  }
   0x3   :  { %s17_s13 = sshll.u32 %s230_s12, 4  ;;  %s26_s15 = sshll.u32 %s231_s14, 4  ;;  %s18_s13 = int_to_ptr.vmem [resolvable:$true] %s17_s13  ;;  %s258_s15 = int_to_ptr.vmem [resolvable:$true] %s26_s15 }
   0x4   :  { %s158_s18 = scalar_lea.hbm %s304_s0, 16 }
   0x5   :  { %p159_p0 = scmp.ne.s32.totalorder %s304_s0, %s158_s18  ;;  %p162_p1 = scmp.lt.u32.totalorder %s158_s18, %s304_s0 }
   0x7   :  { %p164_p2 = pnand %p162_p1, %p159_p0 }
   0x9   :  { %167 = shalt.err (!%p164_p2)
}
   0xa   :  { %s168_s23 = scalar_lea.vmem %s18_s13, 16  ;;  %s172_s24 = scalar_lea.vmem %s18_s13, 32 }
   0xb   :  { %p169_p3 = scmp.ne.s32.totalorder %s18_s13, %s168_s23  ;;  %p173_p4 = scmp.lt.s32.totalorder %s18_s13, %s18_s13 }
   0xc   :  { %p174_p5 = scmp.lt.s32.totalorder %s172_s24, %s168_s23 }
   0xe   :  { %p175_p6 = por %p174_p5, %p173_p4 }
  0x10   :  { %p176_p7 = pnand %p175_p6, %p169_p3 }
  0x12   :  { %179 = shalt.err (!%p176_p7)
}
  0x13   :  { %20 = dma.hbm_to_vmem [thread:$0]  %s304_s0, 16, %s18_s13, [#allocation3]  }
  0x14   :  { %s180_s29 = scalar_lea.hbm %s305_s1, 256 }
  0x15   :  { %p181_p8 = scmp.ne.s32.totalorder %s305_s1, %s180_s29  ;;  %p184_p9 = scmp.lt.u32.totalorder %s180_s29, %s305_s1 }
  0x17   :  { %p186_p10 = pnand %p184_p9, %p181_p8 }
  0x19   :  { %189 = shalt.err (!%p186_p10)
}
  0x1a   :  { %s190_s7 = scalar_lea.vmem %s258_s15, 256  ;;  %p195_p12 = scmp.lt.s32.totalorder %s258_s15, %s258_s15 }
  0x1b   :  { %p191_p11 = scmp.ne.s32.totalorder %s258_s15, %s190_s7  ;;  %p196_p13 = scmp.lt.s32.totalorder %s190_s7, %s190_s7 }
  0x1d   :  { %p197_p0 = por %p196_p13, %p195_p12 }
  0x1f   :  { %p198_p1 = pnand %p197_p0, %p191_p11 }
  0x21   :  { %201 = shalt.err (!%p198_p1)
}
  0x22   :  { %s232_s0 = smov 128   ;;  %s233_s8 = smov 8  }
  0x23   :  { %32 = dma.hbm_to_vmem [thread:$0]  %s305_s1, 256, %s258_s15, [#allocation6], %s232_s0, %s232_s0, %s233_s8  }
  0x24   :  { %224 = dma.done.wait [#allocation3], 16  }
  0x25   :  { %225 = vsyncadd [#allocation3], 4294967280 }
  0x26   :  { %226 = dma.done.wait [#allocation6], 256  }
  0x27   :  { %227 = vsyncadd [#allocation6], 4294967040  ;;  %v234_v0 = vmov 0.0|0.0   ;;  %vm235_vm0 = vmmov 0   ;;  %v236_v1 = vmov 0.0   ;;  %v42_v2 = vld [vmem:[#allocation5] sm:$0xff] }
  0x28   :  { %147 = vmatprep.subr.bf16.mxu0 %v234_v0  ;;  %144 = vmatprep.mubr.msk.f32.mxu0 %vm235_vm0, %v236_v1  ;;  %v43_v3 = vld [vmem:[#allocation5 + $0x8] sm:$0xff]  ;;  %v41_v5 = vld [vmem:[#allocation2] sm:$0x1]  ;;  %vm45_vm1 = vcmask 130048   ;;  %s237_s1 = smov [#allocation7]  }
  0x29   :  { %v148_v4 = vpack.c.bf16 %v43_v3, %v42_v2  ;;  %v44_v6 = vld [vmem:[%s306_s2] sm:$0x1]  ;;  %s126_s13 = sshll.u32 %s237_s1, 4  ;;  %s127_s13 = int_to_ptr.vmem [resolvable:$true] %s126_s13 }
  0x2a   :  { %s202_s14 = scalar_lea.vmem %s127_s13, 16  ;;  %s206_s15 = scalar_lea.vmem %s127_s13, 32 }
  0x2b   :  { %149 = vmatpush3.bf16.msra.mxu0 %v148_v4  ;;  %p203_p2 = scmp.ne.s32.totalorder %s127_s13, %s202_s14  ;;  %p207_p3 = scmp.lt.s32.totalorder %s127_s13, %s127_s13 }
  0x2c   :  { %p208_p4 = scmp.lt.s32.totalorder %s206_s15, %s202_s14 }
  0x2e   :  { %145 = vmatmul.mubr.msk.f32.vlgmr.msra.gmra.mrb[0].mxu0 %vm45_vm1, %v41_v5  ;;  %p209_p5 = por %p208_p4, %p207_p3 }
  0x30   :  { %p210_p6 = pnand %p209_p5, %p203_p2 }
 0x101   :  { %v115_v7 = vpop.f32.mrb[0].mxu0 }
 0x102   :  { %v116_v8 = vadd.f32 %v115_v7, %v44_v6  ;;  %v146_v9 = vpop.f32.mrb[1].mxu0 }
 0x104   :  { %119 = vst [vmem:[#allocation7] sm:$0x1] %v116_v8 }
 0x105   :  { %213 = shalt.err (!%p210_p6)
}
 0x106   :  { %s214_s18 = scalar_lea.hbm %s307_s3, 16 }
 0x107   :  { %p215_p7 = scmp.ne.s32.totalorder %s307_s3, %s214_s18  ;;  %p218_p8 = scmp.lt.u32.totalorder %s214_s18, %s307_s3 }
 0x109   :  { %p220_p9 = pnand %p218_p8, %p215_p7 }
 0x10b   :  { %223 = shalt.err (!%p220_p9)
}
 0x10c   :  { %129 = dma.vmem_to_hbm [thread:$0]  %s127_s13, 16, %s307_s3, [#allocation4]  }
 0x10d   :  { %228 = dma.done.wait [#allocation4], 16  }
 0x10e   :  { %229 = vsyncadd [#allocation4], 4294967280 }
 0x10f   :  { %133 = vsyncpa [#allocation3], 1 }
 0x110   :  { %134 = vsyncpa [#allocation6], 1 }
 0x111   :  { %135 = vsyncpa [#allocation4], 1 }

</bundles_post_ra>
